<compile_context>
chip_gen: v5e
topology: v5e:2x2
jax: 0.10.0
libtpu: 0.0.40
codegen_flags: <defaults>
</compile_context>

<pallas_src>
import functools

import numpy as np
import jax
import jax.numpy as jnp
from jax.experimental import pallas as pl
from jax.experimental.pallas import tpu as pltpu

# ---- globals referenced by the PyTorch module (chosen deterministically) ----
USE_DROPOUT = False            # dropout is identity in eval mode anyway
DROPOUT_RATE = 0.1
BN_EPS = 1e-5
BN_MOMENTUM = 0.1
ENCODER_BLOCKS = [{'out_ch': 8, 'kernel': 3, 'pad': 1},
                  {'out_ch': 16, 'kernel': 3, 'pad': 1}]
DECODER_BLOCKS = [{'out_ch': 16, 'kernel': 3, 'pad': 1},
                  {'out_ch': 8, 'kernel': 3, 'pad': 1}]
FINAL_KERNEL = 3
FINAL_PADDING = 1

# ---- synthetic model hyper-parameters ----
LENGTH = 64
IN_CHANNELS = 32
LATENT_SIZE = 8
OUT_CHANNELS = 4
BATCH = 2

_SQRT1_2 = 0.7071067811865476


# ---------------------------------------------------------------------------
# host-side helpers (run ONCE inside make_decoder)
# ---------------------------------------------------------------------------
def interp_matrix_np(l_in, l_out):
    """W s.t. y = x @ W == F.interpolate(x, size=l_out, mode='linear', align_corners=True)."""
    w = np.zeros((l_in, l_out), np.float32)
    if l_in == 1:
        w[0, :] = 1.0
        return w
    for j in range(l_out):
        pos = j * (l_in - 1) / (l_out - 1) if l_out > 1 else 0.0
        i0 = min(max(int(np.floor(pos)), 0), l_in - 1)
        i1 = min(i0 + 1, l_in - 1)
        frac = pos - i0
        w[i0, j] += 1.0 - frac
        w[i1, j] += frac
    return w


def seam_mask_np(batch, length, s):
    """(1, batch*length) 0/1 mask: zero where conv tap offset s would read outside
    its own sample (implements the Conv1d zero-padding and the batch seam)."""
    j = np.arange(batch * length) % length
    valid = (j + s >= 0) & (j + s < length)
    return valid.astype(np.float32)[None, :]


def _pack_slab(named_arrays):
    """Pack all 2-D f32 constants into ONE slab (single DMA).  Every region starts
    at an 8-aligned sublane row, column 0, so in-kernel carves are simple static slices."""
    lane_w = max(a.shape[1] for _, a in named_arrays)
    pos, rows, r = {}, [], 0
    for name, a in named_arrays:
        a = np.asarray(a, np.float32)
        h, w = a.shape
        blk = np.zeros((h, lane_w), np.float32)
        blk[:, :w] = a
        rows.append(blk)
        pos[name] = (r, h, w)
        pad = (-h) % 8
        if pad:
            rows.append(np.zeros((pad, lane_w), np.float32))
        r += h + pad
    return np.concatenate(rows, axis=0), pos


def _to_cbl(a):
    """(B, C, L) -> (C, B*L): batch stacked along the lane axis (lane-dense)."""
    b, c, l = a.shape
    return jnp.transpose(a, (1, 0, 2)).reshape(c, b * l)


def _full_spec(shape):
    """Full-array BlockSpec (single grid step; everything VMEM-resident)."""
    shape = tuple(int(d) for d in shape)
    assert len(shape) == 2
    return pl.BlockSpec(shape, lambda i: (0, 0))


# ---------------------------------------------------------------------------
# in-kernel math helpers
# ---------------------------------------------------------------------------
def _gelu_exact(x):
    # PyTorch nn.GELU() default (approximate='none'): 0.5*x*(1+erf(x/sqrt(2))).
    # erf via Abramowitz & Stegun 7.1.26 (|err| < 1.5e-7).  The divide already
    # lowers to an EUP reciprocal; we keep it exact for numerical fidelity
    # (review's approx-reciprocal suggestion intentionally not taken).
    u = x * _SQRT1_2
    a = jnp.abs(u)
    t = 1.0 / (1.0 + 0.3275911 * a)
    poly = t * (0.254829592 + t * (-0.284496736 + t * (1.421413741
              + t * (-1.453152027 + t * 1.061405429))))
    erf_u = jnp.where(u >= 0.0, 1.0, -1.0) * (1.0 - poly * jnp.exp(-a * a))
    return 0.5 * x * (1.0 + erf_u)


# ---------------------------------------------------------------------------
# the single fused kernel
# ---------------------------------------------------------------------------
def _decoder_kernel(meta, *refs):
    """Entire Decoder forward for the whole batch, one grid step.

    Activations are (channels, batch*length) f32 tiles in VMEM.  All constants
    live in one packed slab (carved with static slices).  Conv taps become
    lane shifts + seam masks stacked im2col-style, so each Conv1d+BN is one
    well-shaped MXU matmul; interp/upsample length maps are one small matmul
    per stage; everything else is VPU/EUP elementwise (bias, GELU, tanh)."""
    nb = meta['num_blocks']
    z_ref = refs[0]
    enc_refs = refs[1:1 + nb]
    const_ref = refs[1 + nb]
    o_ref = refs[2 + nb]

    def carve(pos):
        r0, h, w = pos
        return const_ref[r0:r0 + h, 0:w]

    def shift_lanes(v, s):
        # result[:, j] = v[:, j + s]   (zero fill at the global ends)
        if s == 0:
            return v
        c, n = v.shape
        zero = jnp.zeros((c, abs(s)), v.dtype)
        if s > 0:
            return jnp.concatenate([v[:, s:], zero], axis=1)
        return jnp.concatenate([zero, v[:, :n + s]], axis=1)

    def im2col(v, kernel, pad, mask_pos):
        # stack the K conv taps along the channel (sublane) axis -> ONE matmul per conv
        taps = []
        for k in range(kernel):
            s = k - pad
            t = shift_lanes(v, s)
            if s != 0:
                t = t * carve(mask_pos[k])      # zero-pad + batch-seam mask
            taps.append(t)
        return jnp.concatenate(taps, axis=0)

    # adapt_nn + ReLU.  z_ref is pre-replicated to (LATENT, B*l_enc0); since the
    # PyTorch interp starts from a length-1 signal this replication IS the interp.
    x = jnp.maximum(
        jnp.dot(carve(meta['adapt_w']), z_ref[...],
                preferred_element_type=jnp.float32) + carve(meta['adapt_b']), 0.0)

    # Decoder Conv_blocks: interp -> cat(skip) -> Conv1d -> BN(eval) -> GELU -> Upsample(x2)
    # (dropout = identity in eval; BN folded into conv weight/bias on the host;
    #  the block's x2 upsample + the next interp are folded into the next P map.)
    for i, blk in enumerate(meta['blocks']):
        if blk['p_map'] is not None:
            x = jnp.dot(x, carve(blk['p_map']), preferred_element_type=jnp.float32)
        cat = jnp.concatenate([x, enc_refs[i][...]], axis=0)
        slab = im2col(cat, blk['kernel'], blk['pad'], blk['mask'])
        x = _gelu_exact(jnp.dot(carve(blk['w']), slab,
                                preferred_element_type=jnp.float32) + carve(blk['b']))

    # final: Upsample(x2) + interp(LENGTH) folded into P_f; decode_conv; tanh.
    fin = meta['final']
    x = jnp.dot(x, carve(fin['p_map']), preferred_element_type=jnp.float32)
    slab = im2col(x, fin['kernel'], fin['pad'], fin['mask'])
    o_ref[...] = jnp.tanh(jnp.dot(carve(fin['w']), slab,
                                  preferred_element_type=jnp.float32) + carve(fin['b']))


# ---------------------------------------------------------------------------
# parameters (raw, PyTorch-like) + one-time prep + jitted forward
# ---------------------------------------------------------------------------
def init_params(key):
    """Raw parameters mirroring the PyTorch module's state_dict (eval mode)."""
    keys = iter(jax.random.split(key, 20))
    p = {'adapt_w': 0.2 * jax.random.normal(next(keys), (IN_CHANNELS, LATENT_SIZE), jnp.float32),
         'adapt_b': 0.1 * jax.random.normal(next(keys), (IN_CHANNELS,), jnp.float32)}
    enc_chs = [spec['out_ch'] for spec in ENCODER_BLOCKS][::-1]
    blocks, ch_in = [], IN_CHANNELS
    for idx, spec in enumerate(DECODER_BLOCKS):
        c_cat, c_out, K = ch_in + enc_chs[idx], spec['out_ch'], spec['kernel']
        blocks.append({
            'conv_w': 0.1 * jax.random.normal(next(keys), (c_out, c_cat, K), jnp.float32),
            'conv_b': 0.05 * jax.random.normal(next(keys), (c_out,), jnp.float32),
            'bn_gamma': 1.0 + 0.1 * jax.random.normal(next(keys), (c_out,), jnp.float32),
            'bn_beta': 0.05 * jax.random.normal(next(keys), (c_out,), jnp.float32),
            'bn_mean': 0.05 * jax.random.normal(next(keys), (c_out,), jnp.float32),
            'bn_var': 1.0 + 0.1 * jnp.abs(jax.random.normal(next(keys), (c_out,), jnp.float32)),
            'kernel': K, 'pad': spec['pad']})
        ch_in = c_out
    p['blocks'] = blocks
    p['decode_w'] = 0.1 * jax.random.normal(next(keys), (OUT_CHANNELS, ch_in, FINAL_KERNEL),
                                            jnp.float32)
    p['decode_b'] = 0.05 * jax.random.normal(next(keys), (OUT_CHANNELS,), jnp.float32)
    return p


def make_decoder(params, skip_shapes, batch):
    """One-time host prep (BN folding, interp/upsample maps, seam masks, constant
    packing) and a jitted forward(z, skip_connections).  No per-call numpy work."""
    p = jax.tree_util.tree_map(np.asarray, params)
    nb = len(p['blocks'])
    enc_shapes = [tuple(int(d) for d in skip_shapes[-(i + 1)]) for i in range(nb)]
    enc_lens = [s[2] for s in enc_shapes]

    named = []
    def add(name, arr):
        named.append((name, np.asarray(arr, np.float32)))
        return name

    add('aw', p['adapt_w'])                               # (IN_CH, LATENT) torch Linear layout
    add('ab', p['adapt_b'].reshape(-1, 1))                # (IN_CH, 1)

    blocks_meta = []
    ch_in = int(p['adapt_w'].shape[0])
    prev_conv_len = None
    for i, blk in enumerate(p['blocks']):
        K, pad = int(blk['kernel']), int(blk['pad'])
        l_enc, c_skip = enc_lens[i], enc_shapes[i][1]
        l_conv = l_enc + 2 * pad - K + 1
        # TODO(synk): support l_conv != l_enc (would need per-tap length-remap matrices).
        assert l_conv == l_enc, "in-place tap shifts need 'same'-length convs"
        assert tuple(blk['conv_w'].shape) == (blk['conv_w'].shape[0], ch_in + c_skip, K)

        p_name = None
        if i > 0:
            # previous block's Upsample(x2, linear, align_corners=True) composed with
            # this iteration's F.interpolate(size=l_enc), batch-block-diagonal.
            m = (interp_matrix_np(prev_conv_len, 2 * prev_conv_len)
                 @ interp_matrix_np(2 * prev_conv_len, l_enc))
            p_name = add(f'p{i}', np.kron(np.eye(batch, dtype=np.float32), m))

        # fold BatchNorm (eval, running stats) into the conv; stack the K taps along
        # the contraction axis (im2col weight layout): (c_out, K*(ch_in + c_skip)).
        scale = blk['bn_gamma'] / np.sqrt(blk['bn_var'] + BN_EPS)
        shift = blk['bn_beta'] - blk['bn_mean'] * scale
        w_bn = blk['conv_w'] * scale[:, None, None]
        add(f'w{i}', np.concatenate([w_bn[:, :, k] for k in range(K)], axis=1))
        add(f'b{i}', (scale * blk['conv_b'] + shift).reshape(-1, 1))

        masks = []
        for k in range(K):
            s = k - pad
            masks.append(None if s == 0 else add(f'm{i}_{k}', seam_mask_np(batch, l_enc, s)))
        blocks_meta.append(dict(p_map=p_name, w=f'w{i}', b=f'b{i}', mask=masks,
                                kernel=K, pad=pad))
        prev_conv_len = l_conv
        ch_in = int(w_bn.shape[0])

    # final stage: last block's Upsample(x2) + interp(LENGTH) + decode_conv + tanh
    K, pad = int(FINAL_KERNEL), int(FINAL_PADDING)
    l_fin = LENGTH + 2 * pad - K + 1
    assert l_fin == LENGTH, "decode_conv must preserve length for in-place tap shifts"
    m = (interp_matrix_np(prev_conv_len, 2 * prev_conv_len)
         @ interp_matrix_np(2 * prev_conv_len, LENGTH))
    add('pf', np.kron(np.eye(batch, dtype=np.float32), m))

    out_ch = int(p['decode_b'].shape[0])
    out_rows = ((out_ch + 7) // 8) * 8                    # full-sublane, unmasked output store
    wf = np.zeros((out_rows, K * ch_in), np.float32)
    wf[:out_ch] = np.concatenate([p['decode_w'][:, :, k] for k in range(K)], axis=1)
    add('wf', wf)
    bf = np.zeros((out_rows, 1), np.float32)
    bf[:out_ch, 0] = p['decode_b']
    add('bf', bf)
    fmasks = []
    for k in range(K):
        s = k - pad
        fmasks.append(None if s == 0 else add(f'mf{k}', seam_mask_np(batch, LENGTH, s)))

    slab_np, pos = _pack_slab(named)
    look = lambda n: None if n is None else pos[n]
    meta = dict(
        num_blocks=nb,
        adapt_w=pos['aw'], adapt_b=pos['ab'],
        blocks=[dict(p_map=look(b['p_map']), w=pos[b['w']], b=pos[b['b']],
                     mask=[look(mn) for mn in b['mask']],
                     kernel=b['kernel'], pad=b['pad']) for b in blocks_meta],
        final=dict(p_map=pos['pf'], w=pos['wf'], b=pos['bf'],
                   mask=[look(mn) for mn in fmasks], kernel=K, pad=pad),
    )

    const_slab = jnp.asarray(slab_np)                     # uploaded to device exactly once
    kernel = functools.partial(_decoder_kernel, meta)
    n_out = batch * l_fin
    l0 = enc_lens[0]

    @jax.jit
    def forward(z, skip_connections):
        # layout plumbing only (fused/cached by jit):
        #   z    -> (LATENT, B*l_enc0) lane-dense, replicated (== length-1 interp)
        #   skip -> (C, B*L) lane-dense
        z_rep = jnp.repeat(jnp.transpose(z), l0, axis=1)
        encs = [_to_cbl(skip_connections[-(i + 1)]) for i in range(nb)]
        operands = [z_rep, *encs, const_slab]
        out2d = pl.pallas_call(
            kernel,
            out_shape=jax.ShapeDtypeStruct((out_rows, n_out), jnp.float32),
            grid=(1,),
            in_specs=[_full_spec(op.shape) for op in operands],
            out_specs=pl.BlockSpec((out_rows, n_out), lambda i: (0, 0)),
            compiler_params=pltpu.CompilerParams(dimension_semantics=("arbitrary",)),
        )(*operands)
        out = out2d[:out_ch].reshape(out_ch, batch, l_fin)
        return jnp.transpose(out, (1, 0, 2))              # (B, OUT_CHANNELS, LENGTH)

    return forward


if __name__ == "__main__":
    key = jax.random.PRNGKey(0)
    k_p, k_z, k_s1, k_s2 = jax.random.split(key, 4)
    params = init_params(k_p)
    z = jax.random.normal(k_z, (BATCH, LATENT_SIZE), jnp.float32)
    # skip_connections: shallow -> deep (the decoder indexes them from the end)
    skip_connections = [
        jax.random.normal(k_s1, (BATCH, ENCODER_BLOCKS[0]['out_ch'], LENGTH // 2), jnp.float32),
        jax.random.normal(k_s2, (BATCH, ENCODER_BLOCKS[1]['out_ch'], LENGTH // 4), jnp.float32),
    ]
    forward = make_decoder(params, [tuple(s.shape) for s in skip_connections], BATCH)
    out = forward(z, skip_connections)
    jax.block_until_ready(out)
    out = forward(z, skip_connections)      # second call: jit cache hit, no host rebuild
    jax.block_until_ready(out)
    assert out.shape == (BATCH, OUT_CHANNELS, LENGTH), out.shape
    assert bool(jnp.all(jnp.isfinite(out)))
    print("KERNEL_OK")
</pallas_src>

<mosaic_0001>
module attributes {stable_mosaic.version = 11 : i64} {
  func.func @_decoder_kernel(%arg0: i32, %arg1: memref<8x32xf32, #tpu.memory_space<vmem>>, %arg2: memref<16x32xf32, #tpu.memory_space<vmem>>, %arg3: memref<8x64xf32, #tpu.memory_space<vmem>>, %arg4: memref<272x144xf32, #tpu.memory_space<vmem>>, %arg5: memref<8x128xf32, #tpu.memory_space<vmem>>) attributes {dimension_semantics = [#tpu.dimension_semantics<arbitrary>], iteration_bounds = array<i64: 1>, scalar_prefetch = 0 : i64, scratch_operands = 0 : i64, tpu.core_type = #tpu.core_type<tc>, window_params = [{pipeline_mode = #tpu.pipeline_mode<synchronous>, transform_indices = @transform_0, window_bounds = array<i64: 8, 32>}, {pipeline_mode = #tpu.pipeline_mode<synchronous>, transform_indices = @transform_1, window_bounds = array<i64: 16, 32>}, {pipeline_mode = #tpu.pipeline_mode<synchronous>, transform_indices = @transform_2, window_bounds = array<i64: 8, 64>}, {pipeline_mode = #tpu.pipeline_mode<synchronous>, transform_indices = @transform_3, window_bounds = array<i64: 272, 144>}, {pipeline_mode = #tpu.pipeline_mode<synchronous>, transform_indices = @transform_4, window_bounds = array<i64: 8, 128>}]} {
    %c0 = arith.constant 0 : index
    %c0_0 = arith.constant 0 : index
    %0 = vector.load %arg4[%c0, %c0_0] : memref<272x144xf32, #tpu.memory_space<vmem>>, vector<32x8xf32>
    %c0_1 = arith.constant 0 : index
    %c0_2 = arith.constant 0 : index
    %1 = vector.load %arg1[%c0_1, %c0_2] : memref<8x32xf32, #tpu.memory_space<vmem>>, vector<8x32xf32>
    %cst = arith.constant dense<0.000000e+00> : vector<32x32xf32>
    %2 = tpu.matmul %0, %1, %cst {dimension_numbers = #tpu.dot_dimension_numbers<[1], [0], [0], [1], [0, 0, 1, 1], [], []>} : vector<32x8xf32>, vector<8x32xf32>, vector<32x32xf32> -> vector<32x32xf32>
    %c32 = arith.constant 32 : index
    %c0_3 = arith.constant 0 : index
    %3 = vector.load %arg4[%c32, %c0_3] : memref<272x144xf32, #tpu.memory_space<vmem>>, vector<32x1xf32>
    %4 = vector.broadcast %3 : vector<32x1xf32> to vector<32x32xf32>
    %5 = arith.addf %2, %4 : vector<32x32xf32>
    %cst_4 = arith.constant 0.000000e+00 : f32
    %6 = vector.broadcast %cst_4 : f32 to vector<32x32xf32>
    %7 = arith.maximumf %5, %6 : vector<32x32xf32>
    %c0_5 = arith.constant 0 : index
    %c0_6 = arith.constant 0 : index
    %8 = vector.load %arg2[%c0_5, %c0_6] : memref<16x32xf32, #tpu.memory_space<vmem>>, vector<16x32xf32>
    %9 = tpu.concatenate %7, %8 in 0 : vector<32x32xf32>, vector<16x32xf32> -> vector<48x32xf32>
    %cst_7 = arith.constant 0.000000e+00 : f32
    %10 = vector.broadcast %cst_7 : f32 to vector<48x1xf32>
    %11 = vector.extract_strided_slice %9 {offsets = [0, 0], sizes = [48, 31], strides = [1, 1]} : vector<48x32xf32> to vector<48x31xf32>
    %12 = tpu.concatenate %10, %11 in 1 : vector<48x1xf32>, vector<48x31xf32> -> vector<48x32xf32>
    %c96 = arith.constant 96 : index
    %c0_8 = arith.constant 0 : index
    %13 = vector.load %arg4[%c96, %c0_8] : memref<272x144xf32, #tpu.memory_space<vmem>>, vector<1x32xf32>
    %14 = vector.broadcast %13 : vector<1x32xf32> to vector<48x32xf32>
    %15 = arith.mulf %12, %14 : vector<48x32xf32>
    %cst_9 = arith.constant 0.000000e+00 : f32
    %16 = vector.broadcast %cst_9 : f32 to vector<48x1xf32>
    %17 = vector.extract_strided_slice %9 {offsets = [0, 1], sizes = [48, 31], strides = [1, 1]} : vector<48x32xf32> to vector<48x31xf32>
    %18 = tpu.concatenate %17, %16 in 1 : vector<48x31xf32>, vector<48x1xf32> -> vector<48x32xf32>
    %c104 = arith.constant 104 : index
    %c0_10 = arith.constant 0 : index
    %19 = vector.load %arg4[%c104, %c0_10] : memref<272x144xf32, #tpu.memory_space<vmem>>, vector<1x32xf32>
    %20 = vector.broadcast %19 : vector<1x32xf32> to vector<48x32xf32>
    %21 = arith.mulf %18, %20 : vector<48x32xf32>
    %22 = tpu.concatenate %15, %9, %21 in 0 : vector<48x32xf32>, vector<48x32xf32>, vector<48x32xf32> -> vector<144x32xf32>
    %c64 = arith.constant 64 : index
    %c0_11 = arith.constant 0 : index
    %23 = vector.load %arg4[%c64, %c0_11] : memref<272x144xf32, #tpu.memory_space<vmem>>, vector<16x144xf32>
    %cst_12 = arith.constant dense<0.000000e+00> : vector<16x32xf32>
    %24 = tpu.matmul %23, %22, %cst_12 {dimension_numbers = #tpu.dot_dimension_numbers<[1], [0], [0], [1], [0, 0, 1, 1], [], []>} : vector<16x144xf32>, vector<144x32xf32>, vector<16x32xf32> -> vector<16x32xf32>
    %c80 = arith.constant 80 : index
    %c0_13 = arith.constant 0 : index
    %25 = vector.load %arg4[%c80, %c0_13] : memref<272x144xf32, #tpu.memory_space<vmem>>, vector<16x1xf32>
    %26 = vector.broadcast %25 : vector<16x1xf32> to vector<16x32xf32>
    %27 = arith.addf %24, %26 : vector<16x32xf32>
    %cst_14 = arith.constant 0.707106769 : f32
    %28 = vector.broadcast %cst_14 : f32 to vector<16x32xf32>
    %29 = arith.mulf %27, %28 : vector<16x32xf32>
    %30 = math.absf %29 : vector<16x32xf32>
    %cst_15 = arith.constant 0.327591091 : f32
    %31 = vector.broadcast %cst_15 : f32 to vector<16x32xf32>
    %32 = arith.mulf %31, %30 : vector<16x32xf32>
    %cst_16 = arith.constant 1.000000e+00 : f32
    %33 = vector.broadcast %cst_16 : f32 to vector<16x32xf32>
    %34 = arith.addf %33, %32 : vector<16x32xf32>
    %cst_17 = arith.constant 1.000000e+00 : f32
    %35 = vector.broadcast %cst_17 : f32 to vector<16x32xf32>
    %36 = arith.divf %35, %34 : vector<16x32xf32>
    %cst_18 = arith.constant 1.06140542 : f32
    %37 = vector.broadcast %cst_18 : f32 to vector<16x32xf32>
    %38 = arith.mulf %36, %37 : vector<16x32xf32>
    %cst_19 = arith.constant -1.45315206 : f32
    %39 = vector.broadcast %cst_19 : f32 to vector<16x32xf32>
    %40 = arith.addf %39, %38 : vector<16x32xf32>
    %41 = arith.mulf %36, %40 : vector<16x32xf32>
    %cst_20 = arith.constant 1.42141378 : f32
    %42 = vector.broadcast %cst_20 : f32 to vector<16x32xf32>
    %43 = arith.addf %42, %41 : vector<16x32xf32>
    %44 = arith.mulf %36, %43 : vector<16x32xf32>
    %cst_21 = arith.constant -0.284496725 : f32
    %45 = vector.broadcast %cst_21 : f32 to vector<16x32xf32>
    %46 = arith.addf %45, %44 : vector<16x32xf32>
    %47 = arith.mulf %36, %46 : vector<16x32xf32>
    %cst_22 = arith.constant 0.254829586 : f32
    %48 = vector.broadcast %cst_22 : f32 to vector<16x32xf32>
    %49 = arith.addf %48, %47 : vector<16x32xf32>
    %50 = arith.mulf %36, %49 : vector<16x32xf32>
    %cst_23 = arith.constant 0.000000e+00 : f32
    %51 = vector.broadcast %cst_23 : f32 to vector<16x32xf32>
    %52 = arith.cmpf oge, %29, %51 : vector<16x32xf32>
    %cst_24 = arith.constant 1.000000e+00 : f32
    %cst_25 = arith.constant -1.000000e+00 : f32
    %53 = vector.broadcast %cst_24 : f32 to vector<16x32xf32>
    %54 = vector.broadcast %cst_25 : f32 to vector<16x32xf32>
    %55 = arith.select %52, %53, %54 : vector<16x32xi1>, vector<16x32xf32>
    %cst_26 = arith.constant 0.000000e+00 : f32
    %56 = vector.broadcast %cst_26 : f32 to vector<16x32xf32>
    %57 = arith.subf %56, %30 : vector<16x32xf32>
    %58 = arith.mulf %57, %30 : vector<16x32xf32>
    %59 = math.exp %58 : vector<16x32xf32>
    %60 = arith.mulf %50, %59 : vector<16x32xf32>
    %cst_27 = arith.constant 1.000000e+00 : f32
    %61 = vector.broadcast %cst_27 : f32 to vector<16x32xf32>
    %62 = arith.subf %61, %60 : vector<16x32xf32>
    %63 = arith.mulf %55, %62 : vector<16x32xf32>
    %cst_28 = arith.constant 5.000000e-01 : f32
    %64 = vector.broadcast %cst_28 : f32 to vector<16x32xf32>
    %65 = arith.mulf %64, %27 : vector<16x32xf32>
    %cst_29 = arith.constant 1.000000e+00 : f32
    %66 = vector.broadcast %cst_29 : f32 to vector<16x32xf32>
    %67 = arith.addf %66, %63 : vector<16x32xf32>
    %68 = arith.mulf %65, %67 : vector<16x32xf32>
    %c112 = arith.constant 112 : index
    %c0_30 = arith.constant 0 : index
    %69 = vector.load %arg4[%c112, %c0_30] : memref<272x144xf32, #tpu.memory_space<vmem>>, vector<32x64xf32>
    %cst_31 = arith.constant dense<0.000000e+00> : vector<16x64xf32>
    %70 = tpu.matmul %68, %69, %cst_31 {dimension_numbers = #tpu.dot_dimension_numbers<[1], [0], [0], [1], [0, 0, 1, 1], [], []>} : vector<16x32xf32>, vector<32x64xf32>, vector<16x64xf32> -> vector<16x64xf32>
    %c0_32 = arith.constant 0 : index
    %c0_33 = arith.constant 0 : index
    %71 = vector.load %arg3[%c0_32, %c0_33] : memref<8x64xf32, #tpu.memory_space<vmem>>, vector<8x64xf32>
    %72 = tpu.concatenate %70, %71 in 0 : vector<16x64xf32>, vector<8x64xf32> -> vector<24x64xf32>
    %cst_34 = arith.constant 0.000000e+00 : f32
    %73 = vector.broadcast %cst_34 : f32 to vector<24x1xf32>
    %74 = vector.extract_strided_slice %72 {offsets = [0, 0], sizes = [24, 63], strides = [1, 1]} : vector<24x64xf32> to vector<24x63xf32>
    %75 = tpu.concatenate %73, %74 in 1 : vector<24x1xf32>, vector<24x63xf32> -> vector<24x64xf32>
    %c160 = arith.constant 160 : index
    %c0_35 = arith.constant 0 : index
    %76 = vector.load %arg4[%c160, %c0_35] : memref<272x144xf32, #tpu.memory_space<vmem>>, vector<1x64xf32>
    %77 = vector.broadcast %76 : vector<1x64xf32> to vector<24x64xf32>
    %78 = arith.mulf %75, %77 : vector<24x64xf32>
    %cst_36 = arith.constant 0.000000e+00 : f32
    %79 = vector.broadcast %cst_36 : f32 to vector<24x1xf32>
    %80 = vector.extract_strided_slice %72 {offsets = [0, 1], sizes = [24, 63], strides = [1, 1]} : vector<24x64xf32> to vector<24x63xf32>
    %81 = tpu.concatenate %80, %79 in 1 : vector<24x63xf32>, vector<24x1xf32> -> vector<24x64xf32>
    %c168 = arith.constant 168 : index
    %c0_37 = arith.constant 0 : index
    %82 = vector.load %arg4[%c168, %c0_37] : memref<272x144xf32, #tpu.memory_space<vmem>>, vector<1x64xf32>
    %83 = vector.broadcast %82 : vector<1x64xf32> to vector<24x64xf32>
    %84 = arith.mulf %81, %83 : vector<24x64xf32>
    %85 = tpu.concatenate %78, %72, %84 in 0 : vector<24x64xf32>, vector<24x64xf32>, vector<24x64xf32> -> vector<72x64xf32>
    %c144 = arith.constant 144 : index
    %c0_38 = arith.constant 0 : index
    %86 = vector.load %arg4[%c144, %c0_38] : memref<272x144xf32, #tpu.memory_space<vmem>>, vector<8x72xf32>
    %cst_39 = arith.constant dense<0.000000e+00> : vector<8x64xf32>
    %87 = tpu.matmul %86, %85, %cst_39 {dimension_numbers = #tpu.dot_dimension_numbers<[1], [0], [0], [1], [0, 0, 1, 1], [], []>} : vector<8x72xf32>, vector<72x64xf32>, vector<8x64xf32> -> vector<8x64xf32>
    %c152 = arith.constant 152 : index
    %c0_40 = arith.constant 0 : index
    %88 = vector.load %arg4[%c152, %c0_40] : memref<272x144xf32, #tpu.memory_space<vmem>>, vector<8x1xf32>
    %89 = vector.broadcast %88 : vector<8x1xf32> to vector<8x64xf32>
    %90 = arith.addf %87, %89 : vector<8x64xf32>
    %cst_41 = arith.constant 0.707106769 : f32
    %91 = vector.broadcast %cst_41 : f32 to vector<8x64xf32>
    %92 = arith.mulf %90, %91 : vector<8x64xf32>
    %93 = math.absf %92 : vector<8x64xf32>
    %cst_42 = arith.constant 0.327591091 : f32
    %94 = vector.broadcast %cst_42 : f32 to vector<8x64xf32>
    %95 = arith.mulf %94, %93 : vector<8x64xf32>
    %cst_43 = arith.constant 1.000000e+00 : f32
    %96 = vector.broadcast %cst_43 : f32 to vector<8x64xf32>
    %97 = arith.addf %96, %95 : vector<8x64xf32>
    %cst_44 = arith.constant 1.000000e+00 : f32
    %98 = vector.broadcast %cst_44 : f32 to vector<8x64xf32>
    %99 = arith.divf %98, %97 : vector<8x64xf32>
    %cst_45 = arith.constant 1.06140542 : f32
    %100 = vector.broadcast %cst_45 : f32 to vector<8x64xf32>
    %101 = arith.mulf %99, %100 : vector<8x64xf32>
    %cst_46 = arith.constant -1.45315206 : f32
    %102 = vector.broadcast %cst_46 : f32 to vector<8x64xf32>
    %103 = arith.addf %102, %101 : vector<8x64xf32>
    %104 = arith.mulf %99, %103 : vector<8x64xf32>
    %cst_47 = arith.constant 1.42141378 : f32
    %105 = vector.broadcast %cst_47 : f32 to vector<8x64xf32>
    %106 = arith.addf %105, %104 : vector<8x64xf32>
    %107 = arith.mulf %99, %106 : vector<8x64xf32>
    %cst_48 = arith.constant -0.284496725 : f32
    %108 = vector.broadcast %cst_48 : f32 to vector<8x64xf32>
    %109 = arith.addf %108, %107 : vector<8x64xf32>
    %110 = arith.mulf %99, %109 : vector<8x64xf32>
    %cst_49 = arith.constant 0.254829586 : f32
    %111 = vector.broadcast %cst_49 : f32 to vector<8x64xf32>
    %112 = arith.addf %111, %110 : vector<8x64xf32>
    %113 = arith.mulf %99, %112 : vector<8x64xf32>
    %cst_50 = arith.constant 0.000000e+00 : f32
    %114 = vector.broadcast %cst_50 : f32 to vector<8x64xf32>
    %115 = arith.cmpf oge, %92, %114 : vector<8x64xf32>
    %cst_51 = arith.constant 1.000000e+00 : f32
    %cst_52 = arith.constant -1.000000e+00 : f32
    %116 = vector.broadcast %cst_51 : f32 to vector<8x64xf32>
    %117 = vector.broadcast %cst_52 : f32 to vector<8x64xf32>
    %118 = arith.select %115, %116, %117 : vector<8x64xi1>, vector<8x64xf32>
    %cst_53 = arith.constant 0.000000e+00 : f32
    %119 = vector.broadcast %cst_53 : f32 to vector<8x64xf32>
    %120 = arith.subf %119, %93 : vector<8x64xf32>
    %121 = arith.mulf %120, %93 : vector<8x64xf32>
    %122 = math.exp %121 : vector<8x64xf32>
    %123 = arith.mulf %113, %122 : vector<8x64xf32>
    %cst_54 = arith.constant 1.000000e+00 : f32
    %124 = vector.broadcast %cst_54 : f32 to vector<8x64xf32>
    %125 = arith.subf %124, %123 : vector<8x64xf32>
    %126 = arith.mulf %118, %125 : vector<8x64xf32>
    %cst_55 = arith.constant 5.000000e-01 : f32
    %127 = vector.broadcast %cst_55 : f32 to vector<8x64xf32>
    %128 = arith.mulf %127, %90 : vector<8x64xf32>
    %cst_56 = arith.constant 1.000000e+00 : f32
    %129 = vector.broadcast %cst_56 : f32 to vector<8x64xf32>
    %130 = arith.addf %129, %126 : vector<8x64xf32>
    %131 = arith.mulf %128, %130 : vector<8x64xf32>
    %c176 = arith.constant 176 : index
    %c0_57 = arith.constant 0 : index
    %132 = vector.load %arg4[%c176, %c0_57] : memref<272x144xf32, #tpu.memory_space<vmem>>, vector<64x128xf32>
    %cst_58 = arith.constant dense<0.000000e+00> : vector<8x128xf32>
    %133 = tpu.matmul %131, %132, %cst_58 {dimension_numbers = #tpu.dot_dimension_numbers<[1], [0], [0], [1], [0, 0, 1, 1], [], []>} : vector<8x64xf32>, vector<64x128xf32>, vector<8x128xf32> -> vector<8x128xf32>
    %cst_59 = arith.constant 0.000000e+00 : f32
    %134 = vector.broadcast %cst_59 : f32 to vector<8x1xf32>
    %135 = vector.extract_strided_slice %133 {offsets = [0, 0], sizes = [8, 127], strides = [1, 1]} : vector<8x128xf32> to vector<8x127xf32>
    %136 = tpu.concatenate %134, %135 in 1 : vector<8x1xf32>, vector<8x127xf32> -> vector<8x128xf32>
    %c256 = arith.constant 256 : index
    %c0_60 = arith.constant 0 : index
    %137 = vector.load %arg4[%c256, %c0_60] : memref<272x144xf32, #tpu.memory_space<vmem>>, vector<1x128xf32>
    %138 = vector.broadcast %137 : vector<1x128xf32> to vector<8x128xf32>
    %139 = arith.mulf %136, %138 : vector<8x128xf32>
    %cst_61 = arith.constant 0.000000e+00 : f32
    %140 = vector.broadcast %cst_61 : f32 to vector<8x1xf32>
    %141 = vector.extract_strided_slice %133 {offsets = [0, 1], sizes = [8, 127], strides = [1, 1]} : vector<8x128xf32> to vector<8x127xf32>
    %142 = tpu.concatenate %141, %140 in 1 : vector<8x127xf32>, vector<8x1xf32> -> vector<8x128xf32>
    %c264 = arith.constant 264 : index
    %c0_62 = arith.constant 0 : index
    %143 = vector.load %arg4[%c264, %c0_62] : memref<272x144xf32, #tpu.memory_space<vmem>>, vector<1x128xf32>
    %144 = vector.broadcast %143 : vector<1x128xf32> to vector<8x128xf32>
    %145 = arith.mulf %142, %144 : vector<8x128xf32>
    %146 = tpu.concatenate %139, %133, %145 in 0 : vector<8x128xf32>, vector<8x128xf32>, vector<8x128xf32> -> vector<24x128xf32>
    %c240 = arith.constant 240 : index
    %c0_63 = arith.constant 0 : index
    %147 = vector.load %arg4[%c240, %c0_63] : memref<272x144xf32, #tpu.memory_space<vmem>>, vector<8x24xf32>
    %cst_64 = arith.constant dense<0.000000e+00> : vector<8x128xf32>
    %148 = tpu.matmul %147, %146, %cst_64 {dimension_numbers = #tpu.dot_dimension_numbers<[1], [0], [0], [1], [0, 0, 1, 1], [], []>} : vector<8x24xf32>, vector<24x128xf32>, vector<8x128xf32> -> vector<8x128xf32>
    %c248 = arith.constant 248 : index
    %c0_65 = arith.constant 0 : index
    %149 = vector.load %arg4[%c248, %c0_65] : memref<272x144xf32, #tpu.memory_space<vmem>>, vector<8x1xf32>
    %150 = vector.broadcast %149 : vector<8x1xf32> to vector<8x128xf32>
    %151 = arith.addf %148, %150 : vector<8x128xf32>
    %152 = math.tanh %151 : vector<8x128xf32>
    %c0_66 = arith.constant 0 : index
    %c0_67 = arith.constant 0 : index
    %153 = vector.load %arg5[%c0_66, %c0_67] : memref<8x128xf32, #tpu.memory_space<vmem>>, vector<8x128xf32>
    tpu.vector_store %arg5[%c0_66, %c0_67], %152 {strides = array<i32>} : memref<8x128xf32, #tpu.memory_space<vmem>>, vector<8x128xf32>,
    return
  }
  func.func @transform_0(%arg0: i32) -> (i32, i32) {
    %c0_i32 = arith.constant 0 : i32
    %c0_i32_0 = arith.constant 0 : i32
    %c0_i32_1 = arith.constant 0 : i32
    return %c0_i32, %c0_i32_0 : i32, i32
  }
  func.func @transform_1(%arg0: i32) -> (i32, i32) {
    %c0_i32 = arith.constant 0 : i32
    %c0_i32_0 = arith.constant 0 : i32
    %c0_i32_1 = arith.constant 0 : i32
    return %c0_i32, %c0_i32_0 : i32, i32
  }
  func.func @transform_2(%arg0: i32) -> (i32, i32) {
    %c0_i32 = arith.constant 0 : i32
    %c0_i32_0 = arith.constant 0 : i32
    %c0_i32_1 = arith.constant 0 : i32
    return %c0_i32, %c0_i32_0 : i32, i32
  }
  func.func @transform_3(%arg0: i32) -> (i32, i32) {
    %c0_i32 = arith.constant 0 : i32
    %c0_i32_0 = arith.constant 0 : i32
    %c0_i32_1 = arith.constant 0 : i32
    return %c0_i32, %c0_i32_0 : i32, i32
  }
  func.func @transform_4(%arg0: i32) -> (i32, i32) {
    %c0_i32 = arith.constant 0 : i32
    %c0_i32_0 = arith.constant 0 : i32
    %c0_i32_1 = arith.constant 0 : i32
    return %c0_i32, %c0_i32_0 : i32, i32
  }
}

</mosaic_0001>

<bundles_post_ra>
// kernel: forward.1
= control target key start
LH: loop header
LB: loop body
LE: loop exit
PB: predicated region body
PF: predicated region fallthrough
CT: control target
= control target key end

     0   :  { %9 = vsyncpa [#allocation3], 0  ;;  %s616_s18 = smov [#allocation2]   ;;  %s617_s20 = smov 256   ;;  %s735_s0 = inlined_call_operand.vmem [shape: f32[8,32], index: 0, kind: input, shape index: {}]   ;;  %s736_s1 = inlined_call_operand.vmem [shape: f32[16,32], index: 1, kind: input, shape index: {}]   ;;  %s737_s2 = inlined_call_operand.vmem [shape: f32[8,64], index: 2, kind: input, shape index: {}]   ;;  %s738_s3 = inlined_call_operand.hbm [shape: f32[272,144], index: 3, kind: input, shape index: {}]   ;;  %s739_s4 = inlined_call_operand.vmem [shape: f32[8,128], index: 4, kind: output, shape index: {}]  }
   0x1   :  { %s20_s17 = sshll.u32 %s738_s3, 4  ;;  %s22_s19 = sshll.u32 %s616_s18, 4  ;;  %s21_s17 = int_to_ptr.hbm [resolvable:$true] %s20_s17  ;;  %s23_s19 = int_to_ptr.vmem [resolvable:$true] %s22_s19 }
   0x2   :  { %s618_s21 = smov 16  }
   0x3   :  { %28 = dma.hbm_to_vmem [thread:$0]  %s21_s17, 8704, %s23_s19, [#allocation3], %s617_s20, %s617_s20, %s618_s21  }
   0x4   :  { %614 = dma.done.wait [#allocation3], 8704  }
   0x5   :  { %615 = vsyncadd [#allocation3], 4294958592  ;;  %v619_v0 = vmov 0   ;;  %vm62_vm0 = vcmask 64512   ;;  %v37_v1 = vld [vmem:[%s735_s0] sm:$0xff]  ;;  %v39_v3 = vld [vmem:[#allocation2 + $0x50] sm:$0xff] }
   0x6   :  { %574 = vset.pattern.permute.xlu1 %v619_v0  ;;  %573 = vset.pattern.permute.xlu0 %v619_v0  ;;  %v33_v2 = vld [vmem:[#allocation2] sm:$0xff]  ;;  %v41_v4 = vld [vmem:[#allocation2 + $0x70] sm:$0xff]  ;;  %s620_s0 = smov 127   ;;  %s621_s25 = smov 1   ;;  %v109_v27 = vld [vmem:[%s736_s1 + $0x8] sm:$0xff]  ;;  %vm166_vm1 = vcmask 252928  }
   0x7   :  { %575 = vset.pattern.permute.xlu2 %v619_v0  ;;  %90 = vmatpush.msra.mxu0 %v37_v1  ;;  %v38_v5 = vld [vmem:[#allocation2 + $0x40] sm:$0xff]  ;;  %v34_v6 = vld [vmem:[#allocation2 + $0x10] sm:$0xff]  ;;  %vm134_vm2 = vcmask 7168   ;;  %vm196_vm3 = vcmask 130048   ;;  %vm333_vm13 = vcmask 261120   ;;  %vm392_vm15 = vcmask 515072  }
   0x8   :  { %49 = vperm.xlu1 %574, %v39_v3   ;;  %555 = vmatmul.msk.f32.vlgmr.msra.gmra.mxu0 %vm62_vm0, %v33_v2  ;;  %v40_v7 = vld [vmem:[#allocation2 + $0x60] sm:$0xff]  ;;  %v36_v9 = vld [vmem:[#allocation2 + $0x30] sm:$0xff] }
   0x9   :  { %59 = vperm.xlu0 %573, %v41_v4   ;;  %v35_v8 = vld [vmem:[#allocation2 + $0x20] sm:$0xff]  ;;  %v401_v30 = vld [vmem:[#allocation2 + $0x130] sm:$0xff] }
   0xa   :  { %v108_v20 = vld [vmem:[%s736_s1] sm:$0xff]  ;;  %v518_v31 = vld [vmem:[#allocation2 + $0x1f0] sm:$0xff] }
   0xb   :  { %v680_v28 = vld [vmem:[%s737_s2] sm:$0xff]  ;;  %v173_v32 = vld [vmem:[#allocation2 + $0xd0] ss:$0 sm:$0xff] }
   0xc   :  { %v184_v29 = vld [vmem:[#allocation2 + $0xa0] sm:$0xff]  ;;  %v185_v62 = vld [vmem:[#allocation2 + $0xb0] sm:$0xff] }
   0xd   :  { %v141_v52 = vld [vmem:[#allocation2 + $0xc0] ss:$0 sm:$0xff] }
  0x10   :  { %44 = vperm.xlu1 %574, %v38_v5   ;;  %556 = vmatmul.msk.f32.gmra.mxu0 %vm62_vm0, %v34_v6  ;;  %v181_v5 = vld [vmem:[#allocation2 + $0x88] sm:$0xff] }
  0x11   :  { %54 = vperm.xlu0 %573, %v40_v7  }
  0x18   :  { %557 = vmatmul.msk.f32.gmra.mxu0 %vm62_vm0, %v35_v8  ;;  %v180_v8 = vld [vmem:[#allocation2 + $0x80] sm:$0xff] }
  0x20   :  { %558 = vmatmul.msk.f32.gmra.mxu0 %vm62_vm0, %v36_v9  ;;  %v183_v9 = vld [vmem:[#allocation2 + $0x98] sm:$0xff]  ;;  %vm407_vm0 = vcmask 588800  }
  0x7a   :  { %v50_v10 = vpop.permute.xlu1 %49 }
  0x7b   :  { %v60_v17 = vpop.permute.xlu0 %59 }
  0x82   :  { %v45_v11 = vpop.permute.xlu1 %44 }
  0x83   :  { %v55_v21 = vpop.permute.xlu0 %54 }
  0x85   :  { %v92_v12 = vpop.f32.mrf.mxu0 }
  0x86   :  { %v93_v13 = vadd.f32 %v92_v12, %v45_v11 }
  0x88   :  { %v658_v14 = vmax.f32 %v93_v13, 0.0 }
  0x8a   :  { %148 = vrot.lane.b32.xlu1 %v658_v14, %s620_s0 }
  0x8d   :  { %v95_v15 = vpop.f32.mrf.mxu0 }
  0x8e   :  { %v96_v16 = vadd.f32 %v95_v15, %v50_v10  ;;  %v182_v10 = vld [vmem:[#allocation2 + $0x90] sm:$0xff]  ;;  %v331_v15 = vld [vmem:[#allocation2 + $0x100] sm:$0xff] }
  0x90   :  { %v105_v18 = vmax.f32 %v96_v16, 0.0 }
  0x92   :  { %150 = vrot.lane.b32.xlu0 %v105_v18, %s620_s0 }
  0x95   :  { %v98_v19 = vpop.f32.mrf.mxu0 }
  0x96   :  { %v99_v22 = vadd.f32 %v98_v19, %v55_v21  ;;  %v329_v21 = vld [vmem:[#allocation2 + $0xe0] sm:$0xff] }
  0x98   :  { %v106_v25 = vmax.f32 %v99_v22, 0.0 }
  0x9a   :  { %124 = vrot.lane.b32.xlu0 %v108_v20, %s621_s25 }
  0x9d   :  { %v101_v23 = vpop.f32.mrf.mxu0 }
  0x9e   :  { %v102_v24 = vadd.f32 %v101_v23, %v60_v17 }
  0xa0   :  { %v107_v26 = vmax.f32 %v102_v24, 0.0 }
  0xa2   :  { %154 = vrot.lane.b32.xlu2 %v107_v26, %s620_s0  ;;  %120 = vrot.lane.b32.xlu0 %v106_v25, %s621_s25 }
  0xa3   :  { %122 = vrot.lane.b32.xlu1 %v107_v26, %s621_s25 }
  0xaa   :  { %152 = vrot.lane.b32.xlu2 %v106_v25, %s620_s0  ;;  %116 = vrot.lane.b32.xlu0 %v658_v14, %s621_s25 }
  0xab   :  { %156 = vrot.lane.b32.xlu1 %v108_v20, %s620_s0 }
  0xb2   :  { %126 = vrot.lane.b32.xlu2 %v109_v27, %s621_s25  ;;  %387 = vrot.lane.b32.xlu0 %v680_v28, %s620_s0 }
  0xb3   :  { %188 = vperm.xlu1 %574, %v184_v29  }
  0xba   :  { %158 = vrot.lane.b32.xlu2 %v109_v27, %s620_s0  ;;  %371 = vrot.lane.b32.xlu0 %v680_v28, %s621_s25 }
  0xc2   :  { %118 = vrot.lane.b32.xlu2 %v105_v18, %s621_s25  ;;  %404 = vperm.xlu0 %573, %v401_v30  }
  0xca   :  { %521 = vperm.xlu0 %573, %v518_v31   ;;  %193 = vperm.xlu2 %575, %v185_v62  }
  0xfc   :  { %v155_v33 = vpop.permute.xlu2 %154  ;;  %v149_v36 = vpop.permute.xlu1 %148 }
  0xfd   :  { %v170_v34 = vsel %vm166_vm1, %v155_v33, 0.0  ;;  %v167_v42 = vsel %vm166_vm1, %v149_v36, 0.0 }
  0xfe   :  { %v177_v35 = vmul.f32 %v173_v32, %v170_v34  ;;  %v174_v44 = vmul.f32 %v173_v32, %v167_v42 }
 0x100   :  { %203 = vmatpush.msra.mxu1 %v177_v35 }
 0x104   :  { %v153_v37 = vpop.permute.xlu2 %152  ;;  %v151_v38 = vpop.permute.xlu0 %150 }
 0x105   :  { %v169_v39 = vsel %vm166_vm1, %v153_v37, 0.0  ;;  %v168_v40 = vsel %vm166_vm1, %v151_v38, 0.0 }
 0x106   :  { %v176_v41 = vmul.f32 %v173_v32, %v169_v39  ;;  %v175_v43 = vmul.f32 %v173_v32, %v168_v40 }
 0x108   :  { %204 = vmatpush.msra.mxu1 %v176_v41 }
 0x10a   :  { %205 = vmatpush.msra.mxu1 %v175_v43 }
 0x10c   :  { %v127_v45 = vpop.permute.xlu2 %126  ;;  %v125_v46 = vpop.permute.xlu0 %124  ;;  %206 = vmatpush.msra.mxu1 %v174_v44 }
 0x10d   :  { %v140_v49 = vsel %vm134_vm2, 0.0, %v127_v45  ;;  %v139_v54 = vsel %vm134_vm2, 0.0, %v125_v46 }
 0x10e   :  { %207 = vmatpush.msra.mxu1 %v109_v27  ;;  %v147_v55 = vmul.f32 %v141_v52, %v140_v49  ;;  %v146_v57 = vmul.f32 %v141_v52, %v139_v54 }
 0x110   :  { %208 = vmatpush.msra.mxu1 %v108_v20 }
 0x112   :  { %209 = vmatpush.msra.mxu1 %v107_v26 }
 0x114   :  { %v159_v47 = vpop.permute.xlu2 %158  ;;  %v121_v48 = vpop.permute.xlu0 %120  ;;  %210 = vmatpush.msra.mxu1 %v106_v25 }
 0x115   :  { %v172_v50 = vsel %vm166_vm1, %v159_v47, 0.0  ;;  %v123_v51 = vpop.permute.xlu1 %122  ;;  %v137_v58 = vsel %vm134_vm2, 0.0, %v121_v48 }
 0x116   :  { %211 = vmatpush.msra.mxu1 %v105_v18  ;;  %v179_v53 = vmul.f32 %v173_v32, %v172_v50  ;;  %v138_v56 = vsel %vm134_vm2, 0.0, %v123_v51  ;;  %v144_v2 = vmul.f32 %v141_v52, %v137_v58  ;;  %v330_v18 = vld [vmem:[#allocation2 + $0xf0] sm:$0xff] }
 0x117   :  { %v145_v61 = vmul.f32 %v141_v52, %v138_v56 }
 0x118   :  { %212 = vmatpush.msra.mxu1 %v658_v14  ;;  %240 = vmatpush.msra.mxu2 %v179_v53  ;;  %v332_v14 = vld [vmem:[#allocation2 + $0x110] sm:$0xff] }
 0x119   :  { %352 = vmatpush.msra.mxu3 %v332_v14  ;;  %v622_v14 = vmov -1.0  }
 0x11a   :  { %213 = vmatpush.msra.mxu1 %v147_v55 }
 0x11b   :  { %353 = vmatpush.msra.mxu3 %v331_v15 }
 0x11c   :  { %v119_v59 = vpop.permute.xlu2 %118  ;;  %v117_v60 = vpop.permute.xlu0 %116  ;;  %214 = vmatpush.msra.mxu1 %v146_v57 }
 0x11d   :  { %v136_v63 = vsel %vm134_vm2, 0.0, %v119_v59  ;;  %v157_v0 = vpop.permute.xlu1 %156  ;;  %v135_v3 = vsel %vm134_vm2, 0.0, %v117_v60  ;;  %354 = vmatpush.msra.mxu3 %v330_v18 }
 0x11e   :  { %v171_v1 = vsel %vm166_vm1, %v157_v0, 0.0  ;;  %215 = vmatpush.msra.mxu1 %v145_v61  ;;  %v143_v6 = vmul.f32 %v141_v52, %v136_v63  ;;  %v142_v7 = vmul.f32 %v141_v52, %v135_v3 }
 0x11f   :  { %v178_v4 = vmul.f32 %v173_v32, %v171_v1  ;;  %355 = vmatpush.msra.mxu3 %v329_v21 }
 0x120   :  { %216 = vmatpush.msra.mxu1 %v144_v2 }
 0x121   :  { %241 = vmatpush.msra.mxu2 %v178_v4 }
 0x122   :  { %559 = vmatmul.msk.f32.vlgmr.msra.gmra.mxu2 %vm196_vm3, %v181_v5  ;;  %217 = vmatpush.msra.mxu1 %v143_v6 }
 0x124   :  { %218 = vmatpush.msra.mxu1 %v142_v7  ;;  %v194_v20 = vpop.permute.xlu2 %193 }
 0x125   :  { %219 = vmatmul.f32.vlgmr.msra.gmra.mxu1 %v180_v8  ;;  %v189_v11 = vpop.permute.xlu1 %188 }
 0x12a   :  { %560 = vmatmul.msk.f32.gmra.mxu2 %vm196_vm3, %v183_v9 }
 0x12d   :  { %222 = vmatmul.f32.gmra.mxu1 %v182_v10 }
 0x1a2   :  { %v220_v12 = vpop.f32.mrf.mxu1 }
 0x1a3   :  { %v221_v13 = vadd.f32 %v220_v12, %v189_v11 }
 0x1a5   :  { %v243_v16 = vpop.f32.mrf.mxu2 }
 0x1a6   :  { %v702_v17 = vadd.f32 %v243_v16, %v221_v13 }
 0x1a8   :  { %v705_v19 = vmul.f32 0.70710677, %v702_v17  ;;  %v323_v21 = vmul.f32 0.5, %v702_v17 }
 0x1aa   :  { %v251_v22 = vand.u32 2147483647, %v705_v19  ;;  %v223_v23 = vpop.f32.mrf.mxu1  ;;  %vm305_vm12 = vcmp.ge.f32.partialorder %v705_v19, 0.0 }
 0x1ab   :  { %v224_v24 = vadd.f32 %v223_v23, %v194_v20  ;;  %v307_v15 = vsel %vm305_vm12, 1.0, %v622_v14 }
 0x1ac   :  { %v253_v25 = vmul.f32 0.3275911, %v251_v22  ;;  %v309_v44 = vsub.f32 0.0, %v251_v22 }
 0x1ad   :  { %v246_v26 = vpop.f32.mrf.mxu2 }
 0x1ae   :  { %v255_v27 = vadd.f32 1.0, %v253_v25  ;;  %v708_v29 = vadd.f32 %v246_v26, %v224_v24  ;;  %v311_v51 = vmul.f32 %v309_v44, %v251_v22 }
 0x1b0   :  { %576 = vrcp.f32 %v255_v27  ;;  %v711_v30 = vmul.f32 0.70710677, %v708_v29  ;;  %v268_v37 = vand.u32 2147483648, %v255_v27  ;;  %v266_v39 = vand.u32 2147483647, %v255_v27 }
 0x1b1   :  { %vm262_vm5 = vweird.f32 %v255_v27  ;;  %v313_v58 = vmul.f32 1.442695, %v311_v51 }
 0x1b2   :  { %v252_v31 = vand.u32 2147483647, %v711_v30  ;;  %v269_v41 = vor.u32 1.1754944e-38, %v268_v37  ;;  %vm267_vm7 = vcmp.eq.f32.partialorder %v266_v39, 8.507059e+37  ;;  %vm306_vm14 = vcmp.ge.f32.partialorder %v711_v30, 0.0  ;;  %v388_v30 = vpop.permute.xlu0 %387 }
 0x1b3   :  { %v396_v37 = vld [vmem:[#allocation2 + $0x150] ss:$0 sm:$0xff] }
 0x1b4   :  { %v254_v32 = vmul.f32 0.3275911, %v252_v31  ;;  %v310_v60 = vsub.f32 0.0, %v252_v31 }
 0x1b6   :  { %v577_v33 = vpop.eup %576  ;;  %v256_v35 = vadd.f32 1.0, %v254_v32  ;;  %v312_v2 = vmul.f32 %v310_v60, %v252_v31  ;;  %v324_v32 = vmul.f32 0.5, %v708_v29 }
 0x1b7   :  { %v258_v34 = vmul.f32 %v577_v33, %v255_v27  ;;  %vm263_vm4 = vweird.f32 %v577_v33  ;;  %v308_v27 = vsel %vm306_vm14, 1.0, %v622_v14 }
 0x1b8   :  { %578 = vrcp.f32 %v256_v35  ;;  %vm264_vm6 = vmor %vm262_vm5, %vm263_vm4  ;;  %v283_v49 = vand.u32 2147483648, %v256_v35  ;;  %v281_v53 = vand.u32 2147483647, %v256_v35  ;;  %vm277_vm9 = vweird.f32 %v256_v35 }
 0x1b9   :  { %v259_v36 = vsub.f32 1.0, %v258_v34  ;;  %580 = vpow2.f32 %v313_v58  ;;  %v315_v7 = vmul.f32 1.442695, %v312_v2  ;;  %v474_v2 = vld [vmem:[#allocation2 + $0x190] sm:$0xff] }
 0x1ba   :  { %v284_v57 = vor.u32 1.1754944e-38, %v283_v49  ;;  %vm282_vm11 = vcmp.eq.f32.partialorder %v281_v53, 8.507059e+37  ;;  %v372_v44 = vpop.permute.xlu0 %371 }
 0x1bb   :  { %v260_v38 = vmul.f32 %v577_v33, %v259_v36  ;;  %582 = vpow2.f32 %v315_v7  ;;  %v395_v36 = vsel %vm392_vm15, %v388_v30, 0.0  ;;  %v472_v7 = vld [vmem:[#allocation2 + $0x170] sm:$0xff] }
 0x1bd   :  { %v261_v40 = vadd.f32 %v577_v33, %v260_v38  ;;  %v399_v38 = vmul.f32 %v396_v37, %v395_v36 }
 0x1be   :  { %v579_v42 = vpop.eup %578 }
 0x1bf   :  { %v265_v43 = vsel %vm264_vm6, %v577_v33, %v261_v40  ;;  %v273_v45 = vmul.f32 %v579_v42, %v256_v35  ;;  %vm278_vm8 = vweird.f32 %v579_v42  ;;  %v581_v9 = vpop.eup %580  ;;  %418 = vmatpush.msrb.mxu2 %v399_v38 }
 0x1c0   :  { %v270_v46 = vsel %vm267_vm7, %v269_v41, %v265_v43  ;;  %vm279_vm10 = vmor %vm277_vm9, %vm278_vm8  ;;  %vm479_vm7 = vcmask 523264   ;;  %vm513_vm8 = vcmask 1039360   ;;  %vm524_vm9 = vcmask 195584  }
 0x1c1   :  { %v287_v47 = vmul.f32 1.0614054, %v270_v46  ;;  %v274_v48 = vsub.f32 1.0, %v273_v45  ;;  %v583_v24 = vpop.eup %582  ;;  %v378_v45 = vsel %vm134_vm2, 0.0, %v372_v44 }
 0x1c3   :  { %v289_v50 = vadd.f32 -1.4531521, %v287_v47  ;;  %v275_v52 = vmul.f32 %v579_v42, %v274_v48  ;;  %v379_v47 = vld [vmem:[#allocation2 + $0x140] ss:$0 sm:$0xff] }
 0x1c4   :  { %v382_v49 = vmul.f32 %v379_v47, %v378_v45  ;;  %v517_v45 = vld [vmem:[#allocation2 + $0x1e0] sm:$0xff] }
 0x1c5   :  { %v291_v54 = vmul.f32 %v289_v50, %v270_v46  ;;  %v276_v55 = vadd.f32 %v579_v42, %v275_v52 }
 0x1c7   :  { %v293_v56 = vadd.f32 1.4214138, %v291_v54  ;;  %v280_v59 = vsel %vm279_vm10, %v579_v42, %v276_v55  ;;  %v400_v54 = vld [vmem:[#allocation2 + $0x120] sm:$0xff]  ;;  %v405_v55 = vpop.permute.xlu0 %404 }
 0x1c8   :  { %v285_v62 = vsel %vm282_vm11, %v284_v57, %v280_v59 }
 0x1c9   :  { %v295_v61 = vmul.f32 %v293_v56, %v270_v46  ;;  %v288_v63 = vmul.f32 1.0614054, %v285_v62 }
 0x1cb   :  { %v297_v0 = vadd.f32 -0.28449672, %v295_v61  ;;  %v290_v1 = vadd.f32 -1.4531521, %v288_v63  ;;  %v478_v61 = vld [vmem:[#allocation2 + $0x1d0] sm:$0xff] }
 0x1cc   :  { %491 = vmatpush.msrb.mxu3 %v478_v61  ;;  %v476_v63 = vld [vmem:[#allocation2 + $0x1b0] sm:$0xff] }
 0x1cd   :  { %v299_v3 = vmul.f32 %v297_v0, %v270_v46  ;;  %v292_v4 = vmul.f32 %v290_v1, %v285_v62  ;;  %v475_v0 = vld [vmem:[#allocation2 + $0x1a0] sm:$0xff] }
 0x1cf   :  { %v301_v5 = vadd.f32 0.2548296, %v299_v3  ;;  %v294_v6 = vadd.f32 1.4214138, %v292_v4  ;;  %v473_v4 = vld [vmem:[#allocation2 + $0x180] sm:$0xff] }
 0x1d1   :  { %v303_v8 = vmul.f32 %v301_v5, %v270_v46  ;;  %v296_v10 = vmul.f32 %v294_v6, %v285_v62 }
 0x1d3   :  { %v317_v11 = vmul.f32 %v581_v9, %v303_v8  ;;  %v298_v12 = vadd.f32 -0.28449672, %v296_v10  ;;  %v471_v10 = vld [vmem:[#allocation2 + $0x160] sm:$0xff] }
 0x1d5   :  { %v319_v13 = vsub.f32 1.0, %v317_v11  ;;  %v300_v16 = vmul.f32 %v298_v12, %v285_v62 }
 0x1d7   :  { %v321_v18 = vmul.f32 %v319_v13, %v307_v15  ;;  %v302_v20 = vadd.f32 0.2548296, %v300_v16 }
 0x1d9   :  { %v325_v22 = vadd.f32 1.0, %v321_v18  ;;  %v304_v23 = vmul.f32 %v302_v20, %v285_v62  ;;  %v477_v62 = vld [vmem:[#allocation2 + $0x1c0] sm:$0xff] }
 0x1da   :  { %492 = vmatpush.msrb.mxu3 %v477_v62 }
 0x1db   :  { %v327_v25 = vmul.f32 %v325_v22, %v323_v21  ;;  %v318_v19 = vmul.f32 %v583_v24, %v304_v23 }
 0x1dc   :  { %493 = vmatpush.msrb.mxu3 %v476_v63 }
 0x1dd   :  { %561 = vmatmul.msk.f32.vlgmr.msra.gmra.mxu3 %vm333_vm13, %v327_v25  ;;  %v320_v26 = vsub.f32 1.0, %v318_v19 }
 0x1de   :  { %494 = vmatpush.msrb.mxu3 %v475_v0 }
 0x1df   :  { %v322_v31 = vmul.f32 %v320_v26, %v308_v27 }
 0x1e0   :  { %495 = vmatpush.msrb.mxu3 %v474_v2 }
 0x1e1   :  { %v326_v33 = vadd.f32 1.0, %v322_v31 }
 0x1e2   :  { %496 = vmatpush.msrb.mxu3 %v473_v4 }
 0x1e3   :  { %v328_v34 = vmul.f32 %v326_v33, %v324_v32 }
 0x1e4   :  { %497 = vmatpush.msrb.mxu3 %v472_v7 }
 0x1e5   :  { %562 = vmatmul.msk.f32.gmra.mxu3 %vm333_vm13, %v328_v34 }
 0x1e6   :  { %498 = vmatpush.msrb.mxu3 %v471_v10 }
 0x260   :  { %v357_v35 = vpop.f32.mrf.mxu3 }
 0x261   :  { %383 = vrot.lane.b32.xlu2 %v357_v35, %s620_s0 }
 0x268   :  { %v360_v17 = vpop.f32.mrf.mxu3 }
 0x269   :  { %367 = vrot.lane.b32.xlu2 %v357_v35, %s621_s25  ;;  %385 = vrot.lane.b32.xlu1 %v360_v17, %s620_s0 }
 0x271   :  { %369 = vrot.lane.b32.xlu1 %v360_v17, %s621_s25 }
 0x2bb   :  { %v384_v29 = vpop.permute.xlu2 %383 }
 0x2bc   :  { %v393_v40 = vsel %vm392_vm15, %v384_v29, 0.0  ;;  %v515_v29 = vld [vmem:[#allocation2 + $0x210] ss:$0 sm:$0xff] }
 0x2bd   :  { %v397_v43 = vmul.f32 %v396_v37, %v393_v40 }
 0x2c3   :  { %v368_v48 = vpop.permute.xlu2 %367 }
 0x2c4   :  { %v376_v51 = vsel %vm134_vm2, 0.0, %v368_v48 }
 0x2c5   :  { %v380_v53 = vmul.f32 %v379_v47, %v376_v51 }
 0x2db   :  { %v386_v39 = vpop.permute.xlu1 %385 }
 0x2dc   :  { %v394_v41 = vsel %vm392_vm15, %v386_v39, 0.0 }
 0x2dd   :  { %v398_v42 = vmul.f32 %v396_v37, %v394_v41 }
 0x2df   :  { %419 = vmatpush.msrb.mxu2 %v398_v42 }
 0x2e1   :  { %420 = vmatpush.msrb.mxu2 %v397_v43  ;;  %v508_v43 = vld [vmem:[#allocation2 + $0x200] ss:$0 sm:$0xff] }
 0x2e3   :  { %421 = vmatpush.msrb.mxu2 %v680_v28  ;;  %v370_v46 = vpop.permute.xlu1 %369 }
 0x2e4   :  { %v377_v50 = vsel %vm134_vm2, 0.0, %v370_v46  ;;  %v522_v46 = vpop.permute.xlu0 %521 }
 0x2e5   :  { %422 = vmatpush.msrb.mxu2 %v360_v17  ;;  %v381_v52 = vmul.f32 %v379_v47, %v377_v50 }
 0x2e7   :  { %423 = vmatpush.msrb.mxu2 %v357_v35 }
 0x2e9   :  { %424 = vmatpush.msrb.mxu2 %v382_v49 }
 0x2eb   :  { %425 = vmatpush.msrb.mxu2 %v381_v52 }
 0x2ed   :  { %426 = vmatpush.msrb.mxu2 %v380_v53 }
 0x2ee   :  { %563 = vmatmul.msk.f32.vlgmr.msrb.gmra.mxu2 %vm407_vm0, %v400_v54 }
 0x371   :  { %v428_v28 = vpop.f32.mrf.mxu2 }
 0x372   :  { %v429_v56 = vadd.f32 %v428_v28, %v405_v55 }
 0x374   :  { %v431_v57 = vmul.f32 0.70710677, %v429_v56  ;;  %v468_v30 = vmul.f32 0.5, %v429_v56 }
 0x376   :  { %v432_v58 = vand.u32 2147483647, %v431_v57  ;;  %vm459_vm6 = vcmp.ge.f32.partialorder %v431_v57, 0.0 }
 0x377   :  { %v460_v35 = vsel %vm459_vm6, 1.0, %v622_v14 }
 0x378   :  { %v433_v59 = vmul.f32 0.3275911, %v432_v58  ;;  %v461_v16 = vsub.f32 0.0, %v432_v58 }
 0x37a   :  { %v434_v60 = vadd.f32 1.0, %v433_v59  ;;  %v462_v21 = vmul.f32 %v461_v16, %v432_v58 }
 0x37c   :  { %584 = vrcp.f32 %v434_v60  ;;  %v446_v6 = vand.u32 2147483648, %v434_v60  ;;  %v444_v9 = vand.u32 2147483647, %v434_v60  ;;  %vm440_vm3 = vweird.f32 %v434_v60 }
 0x37d   :  { %v463_v24 = vmul.f32 1.442695, %v462_v21 }
 0x37e   :  { %v447_v12 = vor.u32 1.1754944e-38, %v446_v6  ;;  %vm445_vm5 = vcmp.eq.f32.partialorder %v444_v9, 8.507059e+37 }
 0x37f   :  { %586 = vpow2.f32 %v463_v24 }
 0x382   :  { %v585_v1 = vpop.eup %584 }
 0x383   :  { %v436_v3 = vmul.f32 %v585_v1, %v434_v60  ;;  %vm441_vm1 = vweird.f32 %v585_v1 }
 0x384   :  { %vm442_vm4 = vmor %vm440_vm3, %vm441_vm1 }
 0x385   :  { %v437_v5 = vsub.f32 1.0, %v436_v3  ;;  %v587_v32 = vpop.eup %586 }
 0x387   :  { %v438_v8 = vmul.f32 %v585_v1, %v437_v5 }
 0x389   :  { %v439_v11 = vadd.f32 %v585_v1, %v438_v8 }
 0x38b   :  { %v443_v13 = vsel %vm442_vm4, %v585_v1, %v439_v11 }
 0x38c   :  { %v448_v15 = vsel %vm445_vm5, %v447_v12, %v443_v13 }
 0x38d   :  { %v450_v18 = vmul.f32 1.0614054, %v448_v15 }
 0x38f   :  { %v451_v20 = vadd.f32 -1.4531521, %v450_v18 }
 0x391   :  { %v452_v22 = vmul.f32 %v451_v20, %v448_v15 }
 0x393   :  { %v453_v23 = vadd.f32 1.4214138, %v452_v22 }
 0x395   :  { %v454_v25 = vmul.f32 %v453_v23, %v448_v15 }
 0x397   :  { %v455_v19 = vadd.f32 -0.28449672, %v454_v25 }
 0x399   :  { %v456_v26 = vmul.f32 %v455_v19, %v448_v15 }
 0x39b   :  { %v457_v27 = vadd.f32 0.2548296, %v456_v26 }
 0x39d   :  { %v458_v31 = vmul.f32 %v457_v27, %v448_v15 }
 0x39f   :  { %v465_v33 = vmul.f32 %v587_v32, %v458_v31 }
 0x3a1   :  { %v466_v34 = vsub.f32 1.0, %v465_v33 }
 0x3a3   :  { %v467_v17 = vmul.f32 %v466_v34, %v460_v35 }
 0x3a5   :  { %v469_v36 = vadd.f32 1.0, %v467_v17 }
 0x3a7   :  { %v470_v37 = vmul.f32 %v469_v36, %v468_v30 }
 0x3a9   :  { %564 = vmatmul.msk.f32.vlgmr.msrb.gmra.mxu3 %vm479_vm7, %v470_v37 }
 0x42c   :  { %v500_v38 = vpop.f32.mrf.mxu3 }
 0x42d   :  { %504 = vrot.lane.b32.xlu2 %v500_v38, %s621_s25  ;;  %510 = vrot.lane.b32.xlu1 %v500_v38, %s620_s0 }
 0x487   :  { %v505_v39 = vpop.permute.xlu2 %504 }
 0x488   :  { %v507_v14 = vsel %vm134_vm2, 0.0, %v505_v39 }
 0x489   :  { %v509_v44 = vmul.f32 %v508_v43, %v507_v14 }
 0x49f   :  { %v511_v40 = vpop.permute.xlu1 %510 }
 0x4a0   :  { %v514_v41 = vsel %vm513_vm8, %v511_v40, 0.0 }
 0x4a1   :  { %v516_v42 = vmul.f32 %v515_v29, %v514_v41 }
 0x4a3   :  { %541 = vmatpush.msra.mxu2 %v516_v42 }
 0x4a5   :  { %542 = vmatpush.msra.mxu2 %v500_v38 }
 0x4a7   :  { %543 = vmatpush.msra.mxu2 %v509_v44 }
 0x4a8   :  { %565 = vmatmul.msk.f32.vlgmr.msra.gmra.mxu2 %vm524_vm9, %v517_v45 }
 0x52b   :  { %v545_v47 = vpop.f32.mrf.mxu2 }
 0x52c   :  { %v546_v48 = vadd.f32 %v545_v47, %v522_v46 }
 0x52e   :  { %588 = vtanh.f32 %v546_v48 }
 0x534   :  { %v589_v49 = vpop.eup %588 }
 0x535   :  { %549 = vst [vmem:[%s739_s4] sm:$0xff] %v589_v49 }
 0x536   :  { %554 = vsyncpa [#allocation3], 1 }

</bundles_post_ra>
